<compile_context>
chip_gen: v6e
topology: v6e:2x2x1
jax: 0.10.0
libtpu: 0.0.40
codegen_flags: <defaults>
</compile_context>

<pallas_src>
from functools import partial

import jax
import jax.numpy as jnp
from jax import lax
from jax.experimental import pallas as pl
from jax.experimental.pallas import tpu as pltpu

# Batch-tile granularity: covers f32/bf16 sublane packing (8/16) for the
# natural layout and the 128-lane granularity of the lane-dense layout.
_TILE_MULT = 512


def _cdiv(a, b):
    return (a + b - 1) // b


def _round_up(a, m):
    return _cdiv(a, m) * m


def _apply_act(v, act):
    if act == "relu":
        return jnp.maximum(v, 0.0)
    if act == "tanh":
        return jnp.tanh(v)
    if act == "sigmoid":
        return jax.nn.sigmoid(v)
    return v  # identity


def _autoencoder_kernel(x_ref, w_enc_ref, w_dec_ref, b_enc_ref, b_dec_ref,
                        *out_refs, act, compute_dtype, with_enc, transposed_out):
    """One batch tile of act(W_dec @ act(W_enc @ x^T + b_e) + b_d)."""
    if with_enc:
        enc_ref, dec_ref = out_refs
    else:
        (dec_ref,) = out_refs
        enc_ref = None

    # Cast x in-kernel (no separate wrapper-side cast/pad pass over HBM).
    x = x_ref[...].astype(compute_dtype)        # (TB, nf)
    w_enc = w_enc_ref[...]                      # (hidden, nf)  PyTorch (out, in)
    w_dec = w_dec_ref[...]                      # (nf, hidden)  PyTorch (out, in)

    if transposed_out:
        # Batch-on-lanes: outputs (hidden, TB) / (nf, TB) -> fully lane-dense
        # stores.  enc_t = W_enc @ x^T is the Q@K^T-style transposed-RHS
        # contraction; the MXU absorbs the transpose.
        h = lax.dot_general(w_enc, x, (((1,), (1,)), ((), ())),
                            preferred_element_type=jnp.float32)      # (hidden, TB)
        enc_f32 = _apply_act(h + b_enc_ref[...], act)                # +(hidden, 1)
        enc_c = enc_f32.astype(compute_dtype)
        if enc_ref is not None:
            enc_ref[...] = enc_c.astype(enc_ref.dtype)
        d = lax.dot_general(w_dec, enc_c, (((1,), (0,)), ((), ())),
                            preferred_element_type=jnp.float32)      # (nf, TB)
        dec_ref[...] = _apply_act(d + b_dec_ref[...], act).astype(dec_ref.dtype)
    else:
        # Natural layout: batch on sublanes, outputs (TB, hidden) / (TB, nf).
        h = lax.dot_general(x, w_enc, (((1,), (1,)), ((), ())),
                            preferred_element_type=jnp.float32)      # x @ W_enc^T
        enc_f32 = _apply_act(h + b_enc_ref[...], act)                # +(1, hidden)
        enc_c = enc_f32.astype(compute_dtype)
        if enc_ref is not None:
            enc_ref[...] = enc_c.astype(enc_ref.dtype)
        d = lax.dot_general(enc_c, w_dec, (((1,), (1,)), ((), ())),
                            preferred_element_type=jnp.float32)      # enc @ W_dec^T
        dec_ref[...] = _apply_act(d + b_dec_ref[...], act).astype(dec_ref.dtype)


def linear_autoencoder_forward(x, w_enc, b_enc, w_dec, b_dec, *,
                               act="relu",
                               block_b=32768,
                               compute_dtype=jnp.bfloat16,
                               out_dtype=None,
                               return_encoded=True,
                               transposed_outputs=False):
    """Fused forward pass of LinearAutoEncoder.

    x:      (B, n_feature)                 (any float dtype; cast in-kernel)
    w_enc:  (hidden, n_feature)            (= PyTorch encoder.weight)
    b_enc:  (hidden,)
    w_dec:  (n_feature, hidden)            (= PyTorch decoder.weight)
    b_dec:  (n_feature,)

    Returns (encoded, decoded) — i.e. generate(X) and forward(X) — or just
    decoded when return_encoded=False.  With transposed_outputs=True the
    outputs are laid out (hidden, B) / (n_feature, B) (lane-dense stores).
    """
    B, nf = x.shape
    hidden, nf_w = w_enc.shape
    assert nf_w == nf and w_dec.shape == (nf, hidden)
    assert b_enc.shape == (hidden,) and b_dec.shape == (nf,)
    out_dtype = compute_dtype if out_dtype is None else out_dtype

    # ---- balanced batch-tile selection (review items 1/2/3/7) -------------
    # Pick the number of grid steps first, then size the tile, so padding is
    # at most one _TILE_MULT group.  Force >=2 (even) steps when there is
    # enough work so the "parallel" axis can split across v7x's two TCs.
    n_steps = _cdiv(B, block_b)
    if B >= 2 * _TILE_MULT:
        n_steps = max(n_steps, 2)
        if n_steps % 2:
            n_steps += 1
    TB = min(_round_up(_cdiv(B, n_steps), _TILE_MULT), _round_up(B, _TILE_MULT))
    grid = (_cdiv(B, TB),)   # ragged final block handled by Pallas masking

    # Tiny weight/bias preprocessing (negligible traffic; x is untouched).
    wc_enc = w_enc.astype(compute_dtype)
    wc_dec = w_dec.astype(compute_dtype)
    if transposed_outputs:
        be = b_enc.astype(jnp.float32).reshape(hidden, 1)
        bd = b_dec.astype(jnp.float32).reshape(nf, 1)
        enc_shape, dec_shape = (hidden, B), (nf, B)
        enc_spec = pl.BlockSpec((hidden, TB), lambda i: (0, i))
        dec_spec = pl.BlockSpec((nf, TB), lambda i: (0, i))
    else:
        be = b_enc.astype(jnp.float32).reshape(1, hidden)
        bd = b_dec.astype(jnp.float32).reshape(1, nf)
        enc_shape, dec_shape = (B, hidden), (B, nf)
        enc_spec = pl.BlockSpec((TB, hidden), lambda i: (i, 0))
        dec_spec = pl.BlockSpec((TB, nf), lambda i: (i, 0))

    out_shape, out_specs = [], []
    if return_encoded:
        out_shape.append(jax.ShapeDtypeStruct(enc_shape, out_dtype))
        out_specs.append(enc_spec)
    out_shape.append(jax.ShapeDtypeStruct(dec_shape, out_dtype))
    out_specs.append(dec_spec)

    # ---- VMEM budget / cost model -----------------------------------------
    out_isz = jnp.dtype(out_dtype).itemsize
    x_blk_bytes = TB * nf * x.dtype.itemsize
    out_blk_bytes = TB * (nf + (hidden if return_encoded else 0)) * out_isz
    # Double-buffered inputs/outputs + generous headroom for resident weights,
    # biases and compiler-internal scratch.
    vmem_limit = int(min(2 * (x_blk_bytes + out_blk_bytes) + (8 << 20), 100 << 20))

    flops = 4 * B * nf * hidden                       # two matmuls, 2 flops/MAC
    transcendentals = B * (hidden + nf) if act in ("tanh", "sigmoid") else 0
    bytes_accessed = (B * nf * x.dtype.itemsize
                      + B * (nf + (hidden if return_encoded else 0)) * out_isz
                      + 2 * nf * hidden * jnp.dtype(compute_dtype).itemsize)

    kernel = pl.pallas_call(
        partial(_autoencoder_kernel, act=act, compute_dtype=compute_dtype,
                with_enc=return_encoded, transposed_out=transposed_outputs),
        out_shape=tuple(out_shape),
        grid=grid,
        in_specs=[
            pl.BlockSpec((TB, nf), lambda i: (i, 0)),       # x: batch-tiled
            pl.BlockSpec((hidden, nf), lambda i: (0, 0)),   # w_enc: VMEM-resident
            pl.BlockSpec((nf, hidden), lambda i: (0, 0)),   # w_dec: VMEM-resident
            pl.BlockSpec(be.shape, lambda i: (0, 0)),       # b_enc
            pl.BlockSpec(bd.shape, lambda i: (0, 0)),       # b_dec
        ],
        out_specs=tuple(out_specs),
        compiler_params=pltpu.CompilerParams(
            dimension_semantics=("parallel",),              # megacore on v7x
            vmem_limit_bytes=vmem_limit,
        ),
        cost_estimate=pl.CostEstimate(
            flops=flops, transcendentals=transcendentals,
            bytes_accessed=bytes_accessed),
    )

    outs = kernel(x, wc_enc, wc_dec, be, bd)
    if return_encoded:
        return outs[0], outs[1]
    return outs[0]


if __name__ == "__main__":
    key = jax.random.PRNGKey(0)
    B, N_FEATURE, HIDDEN = 2048, 32, 8

    kx, kwe, kbe, kwd, kbd = jax.random.split(key, 5)
    x = jax.random.normal(kx, (B, N_FEATURE), jnp.float32)

    # PyTorch nn.Linear default init ranges; weights in native (out, in) layout.
    bound_e = 1.0 / (N_FEATURE ** 0.5)
    w_enc = jax.random.uniform(kwe, (HIDDEN, N_FEATURE), jnp.float32, -bound_e, bound_e)
    b_enc = jax.random.uniform(kbe, (HIDDEN,), jnp.float32, -bound_e, bound_e)
    bound_d = 1.0 / (HIDDEN ** 0.5)
    w_dec = jax.random.uniform(kwd, (N_FEATURE, HIDDEN), jnp.float32, -bound_d, bound_d)
    b_dec = jax.random.uniform(kbd, (N_FEATURE,), jnp.float32, -bound_d, bound_d)

    # Pure-JAX f32 reference (matches the PyTorch forward with act=relu).
    enc_want = jnp.maximum(x @ w_enc.T + b_enc, 0.0)
    dec_want = jnp.maximum(enc_want @ w_dec.T + b_dec, 0.0)

    # 1) f32 compute, natural layout, 4-step grid: tight numeric check.
    enc32, dec32 = linear_autoencoder_forward(
        x, w_enc, b_enc, w_dec, b_dec, block_b=512, compute_dtype=jnp.float32)
    jax.block_until_ready((enc32, dec32))
    assert enc32.shape == (B, HIDDEN) and dec32.shape == (B, N_FEATURE)
    assert jnp.allclose(enc32, enc_want, atol=1e-5, rtol=1e-5)
    assert jnp.allclose(dec32, dec_want, atol=1e-5, rtol=1e-5)

    # 2) Default bf16-compute path (auto-split into 2 parallel grid steps).
    #    Loose tolerance: bf16 input rounding; tight check is the f32 path above.
    enc16, dec16 = linear_autoencoder_forward(x, w_enc, b_enc, w_dec, b_dec)
    jax.block_until_ready((enc16, dec16))
    assert enc16.shape == (B, HIDDEN) and dec16.shape == (B, N_FEATURE)
    assert jnp.allclose(enc16.astype(jnp.float32), enc_want, atol=1e-1, rtol=1e-1)
    assert jnp.allclose(dec16.astype(jnp.float32), dec_want, atol=1e-1, rtol=1e-1)

    # 3) Lane-dense (transposed) output layout.
    enc_t, dec_t = linear_autoencoder_forward(
        x, w_enc, b_enc, w_dec, b_dec, transposed_outputs=True)
    jax.block_until_ready((enc_t, dec_t))
    assert enc_t.shape == (HIDDEN, B) and dec_t.shape == (N_FEATURE, B)
    assert jnp.allclose(enc_t.T.astype(jnp.float32), enc_want, atol=1e-1, rtol=1e-1)
    assert jnp.allclose(dec_t.T.astype(jnp.float32), dec_want, atol=1e-1, rtol=1e-1)

    # 4) Decoder-only output (skips the encoded store stream).
    dec_only = linear_autoencoder_forward(
        x, w_enc, b_enc, w_dec, b_dec, return_encoded=False)
    jax.block_until_ready(dec_only)
    assert dec_only.shape == (B, N_FEATURE)
    assert jnp.allclose(dec_only.astype(jnp.float32), dec_want, atol=1e-1, rtol=1e-1)

    # 5) Ragged batch (not a multiple of the tile): exercises Pallas block
    #    masking — no wrapper-side padding pass is ever made.
    Br = 1000
    enc_r, dec_r = linear_autoencoder_forward(
        x[:Br], w_enc, b_enc, w_dec, b_dec, compute_dtype=jnp.float32)
    jax.block_until_ready((enc_r, dec_r))
    assert enc_r.shape == (Br, HIDDEN) and dec_r.shape == (Br, N_FEATURE)
    assert jnp.allclose(enc_r, enc_want[:Br], atol=1e-5, rtol=1e-5)
    assert jnp.allclose(dec_r, dec_want[:Br], atol=1e-5, rtol=1e-5)

    print("KERNEL_OK")
</pallas_src>

<mosaic_0001>
module attributes {stable_mosaic.version = 11 : i64} {
  func.func @_autoencoder_kernel(%arg0: i32, %arg1: memref<512x32xf32, #tpu.memory_space<vmem>>, %arg2: memref<8x32xf32, #tpu.memory_space<vmem>>, %arg3: memref<32x8xf32, #tpu.memory_space<vmem>>, %arg4: memref<1x8xf32, #tpu.memory_space<vmem>>, %arg5: memref<1x32xf32, #tpu.memory_space<vmem>>, %arg6: memref<512x8xf32, #tpu.memory_space<vmem>>, %arg7: memref<512x32xf32, #tpu.memory_space<vmem>>) attributes {dimension_semantics = [#tpu.dimension_semantics<parallel>], iteration_bounds = array<i64: 4>, scalar_prefetch = 0 : i64, scratch_operands = 0 : i64, tpu.core_type = #tpu.core_type<tc>, window_params = [{transform_indices = @transform_0, window_bounds = array<i64: 512, 32>}, {pipeline_mode = #tpu.pipeline_mode<synchronous>, transform_indices = @transform_1, window_bounds = array<i64: 8, 32>}, {pipeline_mode = #tpu.pipeline_mode<synchronous>, transform_indices = @transform_2, window_bounds = array<i64: 32, 8>}, {pipeline_mode = #tpu.pipeline_mode<synchronous>, transform_indices = @transform_3, window_bounds = array<i64: 1, 8>}, {pipeline_mode = #tpu.pipeline_mode<synchronous>, transform_indices = @transform_4, window_bounds = array<i64: 1, 32>}, {transform_indices = @transform_5, window_bounds = array<i64: 512, 8>}, {transform_indices = @transform_6, window_bounds = array<i64: 512, 32>}]} {
    %c0 = arith.constant 0 : index
    %c0_0 = arith.constant 0 : index
    %0 = vector.load %arg1[%c0, %c0_0] : memref<512x32xf32, #tpu.memory_space<vmem>>, vector<512x32xf32>
    %c0_1 = arith.constant 0 : index
    %c0_2 = arith.constant 0 : index
    %1 = vector.load %arg2[%c0_1, %c0_2] : memref<8x32xf32, #tpu.memory_space<vmem>>, vector<8x32xf32>
    %c0_3 = arith.constant 0 : index
    %c0_4 = arith.constant 0 : index
    %2 = vector.load %arg3[%c0_3, %c0_4] : memref<32x8xf32, #tpu.memory_space<vmem>>, vector<32x8xf32>
    %cst = arith.constant dense<0.000000e+00> : vector<512x8xf32>
    %3 = tpu.matmul %0, %1, %cst {dimension_numbers = #tpu.dot_dimension_numbers<[1], [1], [0], [0], [0, 0, 1, 0], [], []>} : vector<512x32xf32>, vector<8x32xf32>, vector<512x8xf32> -> vector<512x8xf32>
    %c0_5 = arith.constant 0 : index
    %c0_6 = arith.constant 0 : index
    %4 = vector.load %arg4[%c0_5, %c0_6] : memref<1x8xf32, #tpu.memory_space<vmem>>, vector<1x8xf32>
    %5 = vector.broadcast %4 : vector<1x8xf32> to vector<512x8xf32>
    %6 = arith.addf %3, %5 : vector<512x8xf32>
    %cst_7 = arith.constant 0.000000e+00 : f32
    %7 = vector.broadcast %cst_7 : f32 to vector<512x8xf32>
    %8 = arith.maximumf %6, %7 : vector<512x8xf32>
    %c0_8 = arith.constant 0 : index
    %c0_9 = arith.constant 0 : index
    %9 = vector.load %arg6[%c0_8, %c0_9] : memref<512x8xf32, #tpu.memory_space<vmem>>, vector<512x8xf32>
    tpu.vector_store %arg6[%c0_8, %c0_9], %8 {strides = array<i32>} : memref<512x8xf32, #tpu.memory_space<vmem>>, vector<512x8xf32>,
    %cst_10 = arith.constant dense<0.000000e+00> : vector<512x32xf32>
    %10 = tpu.matmul %8, %2, %cst_10 {dimension_numbers = #tpu.dot_dimension_numbers<[1], [1], [0], [0], [0, 0, 1, 0], [], []>} : vector<512x8xf32>, vector<32x8xf32>, vector<512x32xf32> -> vector<512x32xf32>
    %c0_11 = arith.constant 0 : index
    %c0_12 = arith.constant 0 : index
    %11 = vector.load %arg5[%c0_11, %c0_12] : memref<1x32xf32, #tpu.memory_space<vmem>>, vector<1x32xf32>
    %12 = vector.broadcast %11 : vector<1x32xf32> to vector<512x32xf32>
    %13 = arith.addf %10, %12 : vector<512x32xf32>
    %cst_13 = arith.constant 0.000000e+00 : f32
    %14 = vector.broadcast %cst_13 : f32 to vector<512x32xf32>
    %15 = arith.maximumf %13, %14 : vector<512x32xf32>
    %c0_14 = arith.constant 0 : index
    %c0_15 = arith.constant 0 : index
    %16 = vector.load %arg7[%c0_14, %c0_15] : memref<512x32xf32, #tpu.memory_space<vmem>>, vector<512x32xf32>
    tpu.vector_store %arg7[%c0_14, %c0_15], %15 {strides = array<i32>} : memref<512x32xf32, #tpu.memory_space<vmem>>, vector<512x32xf32>,
    return
  }
  func.func @transform_0(%arg0: i32) -> (i32, i32) {
    %c0_i32 = arith.constant 0 : i32
    %c0_i32_0 = arith.constant 0 : i32
    return %arg0, %c0_i32 : i32, i32
  }
  func.func @transform_1(%arg0: i32) -> (i32, i32) {
    %c0_i32 = arith.constant 0 : i32
    %c0_i32_0 = arith.constant 0 : i32
    %c0_i32_1 = arith.constant 0 : i32
    return %c0_i32, %c0_i32_0 : i32, i32
  }
  func.func @transform_2(%arg0: i32) -> (i32, i32) {
    %c0_i32 = arith.constant 0 : i32
    %c0_i32_0 = arith.constant 0 : i32
    %c0_i32_1 = arith.constant 0 : i32
    return %c0_i32, %c0_i32_0 : i32, i32
  }
  func.func @transform_3(%arg0: i32) -> (i32, i32) {
    %c0_i32 = arith.constant 0 : i32
    %c0_i32_0 = arith.constant 0 : i32
    %c0_i32_1 = arith.constant 0 : i32
    return %c0_i32, %c0_i32_0 : i32, i32
  }
  func.func @transform_4(%arg0: i32) -> (i32, i32) {
    %c0_i32 = arith.constant 0 : i32
    %c0_i32_0 = arith.constant 0 : i32
    %c0_i32_1 = arith.constant 0 : i32
    return %c0_i32, %c0_i32_0 : i32, i32
  }
  func.func @transform_5(%arg0: i32) -> (i32, i32) {
    %c0_i32 = arith.constant 0 : i32
    %c0_i32_0 = arith.constant 0 : i32
    return %arg0, %c0_i32 : i32, i32
  }
  func.func @transform_6(%arg0: i32) -> (i32, i32) {
    %c0_i32 = arith.constant 0 : i32
    %c0_i32_0 = arith.constant 0 : i32
    return %arg0, %c0_i32 : i32, i32
  }
}

</mosaic_0001>

<bundles_post_ra>
// kernel: tpu_custom_call.1
= control target key start
LH: loop header
LB: loop body
LE: loop exit
PB: predicated region body
PF: predicated region fallthrough
CT: control target
= control target key end

     0   :  { %s2411_s21 = smov 0   ;;  %s3061_s0 = inlined_call_operand.vmem [shape: f32[2048,32], index: 0, kind: input, shape index: {}]   ;;  %s3062_s1 = inlined_call_operand.vmem [shape: f32[8,32], index: 1, kind: input, shape index: {}]   ;;  %s3063_s2 = inlined_call_operand.vmem [shape: f32[32,8], index: 2, kind: input, shape index: {}]   ;;  %s3064_s3 = inlined_call_operand.vmem [shape: f32[1,8], index: 3, kind: input, shape index: {}]   ;;  %s3065_s4 = inlined_call_operand.vmem [shape: f32[1,32], index: 4, kind: input, shape index: {}]   ;;  %s3066_s5 = inlined_call_operand.vmem [shape: f32[2048,8], index: 5, kind: output, shape index: {0}]   ;;  %s3067_s6 = inlined_call_operand.vmem [shape: f32[2048,32], index: 6, kind: output, shape index: {1}]  }
   0x1 LB: > { %s1869_s22 = sadd.s32 4294967295, %s2374_s21   ;;  %p1873_p0 = scmp.ge.s32.totalorder %s2374_s21, 1  ;;  %s2374_s21 = sphi %s2411_s21, %s17_s21  }
   0x2   : > { %p216_p1 = scmp.lt.s32.totalorder %s2374_s21, 5 }
   0x4   : > { %p217_p2 = pnand %p1873_p0, %p216_p1 }
   0x5   : > { %s1874_s25 = sshll.u32 (!%p217_p2), %s1869_s22, 6 }
   0x6   : > { %220 = sbr.rel (%p217_p2) target bundleno = 540 (0x21c), region = 40  ;;  %p252_p3 = scmp.lt.s32.totalorder (!%p217_p2), %s1874_s25, 255 }
   0xb   : > { %v333_v0 = vld [vmem:[%s3062_s1] sm:$0xff]  ;;  %vm345_vm0 = vcmask 261120   ;;  %s3069_s25 = smov (!%p252_p3, %s1874_s25), 255  ;;  %v337_v1 = vld [vmem:[%s3063_s2 + $0x18] sm:$0xff]  ;;  %vm990_vm1 = vcmask 64512   ;;  %v336_v2 = vld [vmem:[%s3063_s2 + $0x10] sm:$0xff] }
   0xc   : > { %2150 = vmatprep.subr.msk.mxu0 %vm345_vm0, %v333_v0  ;;  %s2424_s26 = sshll.u32 %s3069_s25, 3  ;;  %2352 = vmatprep.subr.msk.mxu1 %vm990_vm1, %v337_v1  ;;  %v335_v38 = vld [vmem:[%s3063_s2 + $0x8] sm:$0xff]  ;;  %v334_v41 = vld [vmem:[%s3063_s2] sm:$0xff] }
   0xd   : > { %2151 = vmatpush3.xpose.msk.msra.mxu0 %vm345_vm0, %v333_v0  ;;  %s2433_s7 = scalar_lea.vmem %s3061_s0, %s2424_s26  ;;  %2356 = vmatpush3.xpose.msk.msra.mxu1 %vm990_vm1, %v337_v1  ;;  %s2598_s18 = scalar_lea.vmem %s3066_s5, %s2424_s26 }
   0xe   : > { %2248 = vmatprep.subr.msk.mxu0 %vm990_vm1, %v337_v1  ;;  %v269_v3 = vld [vmem:[%s2433_s7] sm:$0xff]  ;;  %v270_v4 = vld [vmem:[%s2433_s7 + $0x8] sm:$0xff]  ;;  %v271_v5 = vld [vmem:[%s2433_s7 + $0x10] sm:$0xff]  ;;  %2353 = vmatprep.subr.msk.mxu1 %vm990_vm1, %v336_v2  ;;  %s2865_s24 = scalar_lea.vmem %s3067_s6, %s2424_s26 }
   0xf   : > { %2152 = vmatprep.mubr.msk.f32.mxu0 %vm345_vm0, %v269_v3  ;;  %v272_v6 = vld [vmem:[%s2433_s7 + $0x18] sm:$0xff]  ;;  %v273_v7 = vld [vmem:[%s2433_s7 + $0x20] sm:$0xff]  ;;  %v274_v8 = vld [vmem:[%s2433_s7 + $0x28] sm:$0xff] }
  0x10   : > { %2153 = vmatmul.mubr.msk.f32.vlgmr.msra.gmra.mxu0 %vm345_vm0, %v270_v4  ;;  %v275_v9 = vld [vmem:[%s2433_s7 + $0x30] sm:$0xff]  ;;  %v276_v10 = vld [vmem:[%s2433_s7 + $0x38] sm:$0xff]  ;;  %v277_v11 = vld [vmem:[%s2433_s7 + $0x40] sm:$0xff] }
  0x11   : > { %2155 = vmatprep.mubr.msk.f32.mxu0 %vm345_vm0, %v271_v5  ;;  %2249 = vmatpush3.xpose.msk.msra.mxu0 %vm990_vm1, %v337_v1  ;;  %v278_v12 = vld [vmem:[%s2433_s7 + $0x48] sm:$0xff]  ;;  %v279_v13 = vld [vmem:[%s2433_s7 + $0x50] sm:$0xff]  ;;  %v280_v14 = vld [vmem:[%s2433_s7 + $0x58] sm:$0xff] }
  0x12   : > { %2250 = vmatprep.subr.msk.mxu0 %vm990_vm1, %v336_v2  ;;  %2357 = vmatpush3.xpose.msk.msra.mxu1 %vm990_vm1, %v336_v2  ;;  %v281_v15 = vld [vmem:[%s2433_s7 + $0x60] sm:$0xff]  ;;  %v282_v16 = vld [vmem:[%s2433_s7 + $0x68] sm:$0xff]  ;;  %v283_v17 = vld [vmem:[%s2433_s7 + $0x70] sm:$0xff] }
  0x13   : > { %v284_v18 = vld [vmem:[%s2433_s7 + $0x78] sm:$0xff]  ;;  %v285_v19 = vld [vmem:[%s2433_s7 + $0x80] sm:$0xff]  ;;  %v286_v20 = vld [vmem:[%s2433_s7 + $0x88] sm:$0xff]  ;;  %2354 = vmatprep.subr.msk.mxu1 %vm990_vm1, %v335_v38 }
  0x14   : > { %2156 = vmatmul.mubr.msk.f32.gmra.mxu0 %vm345_vm0, %v272_v6  ;;  %v287_v21 = vld [vmem:[%s2433_s7 + $0x90] sm:$0xff]  ;;  %v288_v22 = vld [vmem:[%s2433_s7 + $0x98] sm:$0xff]  ;;  %v289_v23 = vld [vmem:[%s2433_s7 + $0xa0] sm:$0xff] }
  0x15   : > { %2158 = vmatprep.mubr.msk.f32.mxu0 %vm345_vm0, %v273_v7  ;;  %2251 = vmatpush3.xpose.msk.msra.mxu0 %vm990_vm1, %v336_v2  ;;  %v290_v24 = vld [vmem:[%s2433_s7 + $0xa8] sm:$0xff]  ;;  %v291_v25 = vld [vmem:[%s2433_s7 + $0xb0] sm:$0xff]  ;;  %v292_v26 = vld [vmem:[%s2433_s7 + $0xb8] sm:$0xff] }
  0x16   : > { %v293_v27 = vld [vmem:[%s2433_s7 + $0xc0] sm:$0xff]  ;;  %v294_v28 = vld [vmem:[%s2433_s7 + $0xc8] sm:$0xff]  ;;  %v295_v29 = vld [vmem:[%s2433_s7 + $0xd0] sm:$0xff]  ;;  %2252 = vmatprep.subr.msk.mxu0 %vm990_vm1, %v335_v38  ;;  %2358 = vmatpush3.xpose.msk.msra.mxu1 %vm990_vm1, %v335_v38 }
  0x17   : > { %v296_v30 = vld [vmem:[%s2433_s7 + $0xd8] sm:$0xff]  ;;  %v297_v31 = vld [vmem:[%s2433_s7 + $0xe0] sm:$0xff]  ;;  %v298_v32 = vld [vmem:[%s2433_s7 + $0xe8] sm:$0xff]  ;;  %2355 = vmatprep.subr.msk.mxu1 %vm990_vm1, %v334_v41 }
  0x18   : > { %2159 = vmatmul.mubr.msk.f32.gmra.mxu0 %vm345_vm0, %v274_v8  ;;  %v299_v33 = vld [vmem:[%s2433_s7 + $0xf0] sm:$0xff]  ;;  %v300_v34 = vld [vmem:[%s2433_s7 + $0xf8] sm:$0xff]  ;;  %v301_v35 = vld [vmem:[%s2433_s7 + $0x100] sm:$0xff] }
  0x19   : > { %2161 = vmatprep.mubr.msk.f32.mxu0 %vm345_vm0, %v275_v9  ;;  %v302_v36 = vld [vmem:[%s2433_s7 + $0x108] sm:$0xff]  ;;  %v303_v37 = vld [vmem:[%s2433_s7 + $0x110] sm:$0xff]  ;;  %v304_v39 = vld [vmem:[%s2433_s7 + $0x118] sm:$0xff]  ;;  %2253 = vmatpush3.xpose.msk.msra.mxu0 %vm990_vm1, %v335_v38 }
  0x1a   : > { %v305_v40 = vld [vmem:[%s2433_s7 + $0x120] sm:$0xff]  ;;  %2254 = vmatprep.subr.msk.mxu0 %vm990_vm1, %v334_v41  ;;  %v306_v42 = vld [vmem:[%s2433_s7 + $0x128] sm:$0xff]  ;;  %v307_v43 = vld [vmem:[%s2433_s7 + $0x130] sm:$0xff]  ;;  %2359 = vmatpush3.xpose.msk.msra.mxu1 %vm990_vm1, %v334_v41 }
  0x1b   : > { %v308_v44 = vld [vmem:[%s2433_s7 + $0x138] sm:$0xff]  ;;  %v309_v45 = vld [vmem:[%s2433_s7 + $0x140] sm:$0xff]  ;;  %v310_v46 = vld [vmem:[%s2433_s7 + $0x148] sm:$0xff] }
  0x1c   : > { %2162 = vmatmul.mubr.msk.f32.gmra.mxu0 %vm345_vm0, %v276_v10  ;;  %v311_v47 = vld [vmem:[%s2433_s7 + $0x150] sm:$0xff]  ;;  %v312_v48 = vld [vmem:[%s2433_s7 + $0x158] sm:$0xff]  ;;  %v313_v49 = vld [vmem:[%s2433_s7 + $0x160] sm:$0xff] }
  0x1d   : > { %2164 = vmatprep.mubr.msk.f32.mxu0 %vm345_vm0, %v277_v11  ;;  %2255 = vmatpush3.xpose.msk.msra.mxu0 %vm990_vm1, %v334_v41  ;;  %v314_v50 = vld [vmem:[%s2433_s7 + $0x168] sm:$0xff]  ;;  %v315_v51 = vld [vmem:[%s2433_s7 + $0x170] sm:$0xff]  ;;  %v316_v52 = vld [vmem:[%s2433_s7 + $0x178] sm:$0xff] }
  0x1e   : > { %v317_v53 = vld [vmem:[%s2433_s7 + $0x180] sm:$0xff]  ;;  %v318_v54 = vld [vmem:[%s2433_s7 + $0x188] sm:$0xff]  ;;  %v319_v55 = vld [vmem:[%s2433_s7 + $0x190] sm:$0xff] }
  0x1f   : > { %v320_v56 = vld [vmem:[%s2433_s7 + $0x198] sm:$0xff]  ;;  %v321_v57 = vld [vmem:[%s2433_s7 + $0x1a0] sm:$0xff]  ;;  %v322_v58 = vld [vmem:[%s2433_s7 + $0x1a8] sm:$0xff] }
  0x20   : > { %2165 = vmatmul.mubr.msk.f32.gmra.mxu0 %vm345_vm0, %v278_v12  ;;  %v323_v59 = vld [vmem:[%s2433_s7 + $0x1b0] sm:$0xff]  ;;  %v324_v60 = vld [vmem:[%s2433_s7 + $0x1b8] sm:$0xff]  ;;  %v325_v61 = vld [vmem:[%s2433_s7 + $0x1c0] sm:$0xff] }
  0x21   : > { %2167 = vmatprep.mubr.msk.f32.mxu0 %vm345_vm0, %v279_v13  ;;  %v326_v62 = vld [vmem:[%s2433_s7 + $0x1c8] sm:$0xff]  ;;  %v327_v63 = vld [vmem:[%s2433_s7 + $0x1d0] sm:$0xff]  ;;  %v328_v0 = vld [vmem:[%s2433_s7 + $0x1d8] sm:$0xff] }
  0x22   : > { %v329_v1 = vld [vmem:[%s2433_s7 + $0x1e0] sm:$0xff]  ;;  %v330_v2 = vld [vmem:[%s2433_s7 + $0x1e8] sm:$0xff]  ;;  %v331_v3 = vld [vmem:[%s2433_s7 + $0x1f0] sm:$0xff] }
  0x23   : > { %v332_v4 = vld [vmem:[%s2433_s7 + $0x1f8] sm:$0xff]  ;;  %v2591_v5 = vld [vmem:[%s3064_s3] ss:$0 sm:$0xff] }
  0x24   : > { %2168 = vmatmul.mubr.msk.f32.gmra.mxu0 %vm345_vm0, %v280_v14 }
  0x25   : > { %2170 = vmatprep.mubr.msk.f32.mxu0 %vm345_vm0, %v281_v15 }
  0x28   : > { %2171 = vmatmul.mubr.msk.f32.gmra.mxu0 %vm345_vm0, %v282_v16 }
  0x29   : > { %2173 = vmatprep.mubr.msk.f32.mxu0 %vm345_vm0, %v283_v17 }
  0x2c   : > { %2174 = vmatmul.mubr.msk.f32.gmra.mxu0 %vm345_vm0, %v284_v18 }
  0x2d   : > { %2176 = vmatprep.mubr.msk.f32.mxu0 %vm345_vm0, %v285_v19 }
  0x30   : > { %2177 = vmatmul.mubr.msk.f32.gmra.mxu0 %vm345_vm0, %v286_v20 }
  0x31   : > { %2179 = vmatprep.mubr.msk.f32.mxu0 %vm345_vm0, %v287_v21 }
  0x34   : > { %2180 = vmatmul.mubr.msk.f32.gmra.mxu0 %vm345_vm0, %v288_v22 }
  0x35   : > { %2182 = vmatprep.mubr.msk.f32.mxu0 %vm345_vm0, %v289_v23 }
  0x38   : > { %2183 = vmatmul.mubr.msk.f32.gmra.mxu0 %vm345_vm0, %v290_v24 }
  0x39   : > { %2185 = vmatprep.mubr.msk.f32.mxu0 %vm345_vm0, %v291_v25 }
  0x3c   : > { %2186 = vmatmul.mubr.msk.f32.gmra.mxu0 %vm345_vm0, %v292_v26 }
  0x3d   : > { %2188 = vmatprep.mubr.msk.f32.mxu0 %vm345_vm0, %v293_v27 }
  0x40   : > { %2189 = vmatmul.mubr.msk.f32.gmra.mxu0 %vm345_vm0, %v294_v28 }
  0x41   : > { %2191 = vmatprep.mubr.msk.f32.mxu0 %vm345_vm0, %v295_v29 }
  0x44   : > { %2192 = vmatmul.mubr.msk.f32.gmra.mxu0 %vm345_vm0, %v296_v30 }
  0x45   : > { %2194 = vmatprep.mubr.msk.f32.mxu0 %vm345_vm0, %v297_v31 }
  0x48   : > { %2195 = vmatmul.mubr.msk.f32.gmra.mxu0 %vm345_vm0, %v298_v32 }
  0x49   : > { %2197 = vmatprep.mubr.msk.f32.mxu0 %vm345_vm0, %v299_v33 }
  0x4c   : > { %2198 = vmatmul.mubr.msk.f32.gmra.mxu0 %vm345_vm0, %v300_v34 }
  0x4d   : > { %2200 = vmatprep.mubr.msk.f32.mxu0 %vm345_vm0, %v301_v35 }
  0x50   : > { %2201 = vmatmul.mubr.msk.f32.gmra.mxu0 %vm345_vm0, %v302_v36 }
  0x51   : > { %2203 = vmatprep.mubr.msk.f32.mxu0 %vm345_vm0, %v303_v37 }
  0x54   : > { %2204 = vmatmul.mubr.msk.f32.gmra.mxu0 %vm345_vm0, %v304_v39 }
  0x55   : > { %2206 = vmatprep.mubr.msk.f32.mxu0 %vm345_vm0, %v305_v40 }
  0x58   : > { %2207 = vmatmul.mubr.msk.f32.gmra.mxu0 %vm345_vm0, %v306_v42 }
  0x59   : > { %2209 = vmatprep.mubr.msk.f32.mxu0 %vm345_vm0, %v307_v43 }
  0x5c   : > { %2210 = vmatmul.mubr.msk.f32.gmra.mxu0 %vm345_vm0, %v308_v44 }
  0x5d   : > { %2212 = vmatprep.mubr.msk.f32.mxu0 %vm345_vm0, %v309_v45 }
  0x60   : > { %2213 = vmatmul.mubr.msk.f32.gmra.mxu0 %vm345_vm0, %v310_v46 }
  0x61   : > { %2215 = vmatprep.mubr.msk.f32.mxu0 %vm345_vm0, %v311_v47 }
  0x64   : > { %2216 = vmatmul.mubr.msk.f32.gmra.mxu0 %vm345_vm0, %v312_v48 }
  0x65   : > { %2218 = vmatprep.mubr.msk.f32.mxu0 %vm345_vm0, %v313_v49 }
  0x68   : > { %2219 = vmatmul.mubr.msk.f32.gmra.mxu0 %vm345_vm0, %v314_v50 }
  0x69   : > { %2221 = vmatprep.mubr.msk.f32.mxu0 %vm345_vm0, %v315_v51 }
  0x6c   : > { %2222 = vmatmul.mubr.msk.f32.gmra.mxu0 %vm345_vm0, %v316_v52 }
  0x6d   : > { %2224 = vmatprep.mubr.msk.f32.mxu0 %vm345_vm0, %v317_v53 }
  0x70   : > { %2225 = vmatmul.mubr.msk.f32.gmra.mxu0 %vm345_vm0, %v318_v54 }
  0x71   : > { %2227 = vmatprep.mubr.msk.f32.mxu0 %vm345_vm0, %v319_v55 }
  0x74   : > { %2228 = vmatmul.mubr.msk.f32.gmra.mxu0 %vm345_vm0, %v320_v56 }
  0x75   : > { %2230 = vmatprep.mubr.msk.f32.mxu0 %vm345_vm0, %v321_v57 }
  0x78   : > { %2231 = vmatmul.mubr.msk.f32.gmra.mxu0 %vm345_vm0, %v322_v58 }
  0x79   : > { %2233 = vmatprep.mubr.msk.f32.mxu0 %vm345_vm0, %v323_v59 }
  0x7c   : > { %2234 = vmatmul.mubr.msk.f32.gmra.mxu0 %vm345_vm0, %v324_v60 }
  0x7d   : > { %2236 = vmatprep.mubr.msk.f32.mxu0 %vm345_vm0, %v325_v61 }
  0x80   : > { %2237 = vmatmul.mubr.msk.f32.gmra.mxu0 %vm345_vm0, %v326_v62 }
  0x81   : > { %2239 = vmatprep.mubr.msk.f32.mxu0 %vm345_vm0, %v327_v63 }
  0x84   : > { %2240 = vmatmul.mubr.msk.f32.gmra.mxu0 %vm345_vm0, %v328_v0 }
  0x85   : > { %2242 = vmatprep.mubr.msk.f32.mxu0 %vm345_vm0, %v329_v1 }
  0x88   : > { %2243 = vmatmul.mubr.msk.f32.gmra.mxu0 %vm345_vm0, %v330_v2 }
  0x89   : > { %2245 = vmatprep.mubr.msk.f32.mxu0 %vm345_vm0, %v331_v3 }
  0x8c   : > { %2246 = vmatmul.mubr.msk.f32.gmra.mxu0 %vm345_vm0, %v332_v4 }
  0xd0   : > { %v2154_v6 = vpop.f32.mrf.mxu0 }
  0xd1   : > { %v613_v7 = vadd.f32 %v2154_v6, %v2591_v5 }
  0xd2   : > { %v607_v8 = vpop.f32.mrf.mxu0 }
  0xd3   : > { %v927_v9 = vmax.f32 %v613_v7, 0.0  ;;  %v608_v10 = vadd.f32 %v2591_v5, %v607_v8 }
  0xd4   : > { %v2157_v11 = vpop.f32.mrf.mxu0 }
  0xd5   : > { %992 = vst.msk [vmem:[%s2598_s18 + $0x8] sm:$0xff] %vm990_vm1, %v927_v9  ;;  %v926_v12 = vmax.f32 %v608_v10, 0.0  ;;  %v623_v13 = vadd.f32 %v2157_v11, %v2591_v5 }
  0xd6   : > { %v617_v14 = vpop.f32.mrf.mxu0 }
  0xd7   : > { %991 = vst.msk [vmem:[%s2598_s18] sm:$0xff] %vm990_vm1, %v926_v12  ;;  %v929_v15 = vmax.f32 %v623_v13, 0.0  ;;  %v618_v16 = vadd.f32 %v2591_v5, %v617_v14  ;;  %2256 = vmatprep.mubr.msk.f32.mxu0 %vm990_vm1, %v926_v12 }
  0xd8   : > { %v2160_v17 = vpop.f32.mrf.mxu0  ;;  %2257 = vmatmul.mubr.msk.f32.vlgmr.msra.gmra.mxu0 %vm990_vm1, %v927_v9 }
  0xd9   : > { %994 = vst.msk [vmem:[%s2598_s18 + $0x18] sm:$0xff] %vm990_vm1, %v929_v15  ;;  %v928_v18 = vmax.f32 %v618_v16, 0.0  ;;  %v633_v19 = vadd.f32 %v2160_v17, %v2591_v5 }
  0xda   : > { %v627_v20 = vpop.f32.mrf.mxu0 }
  0xdb   : > { %993 = vst.msk [vmem:[%s2598_s18 + $0x10] sm:$0xff] %vm990_vm1, %v928_v18  ;;  %v931_v21 = vmax.f32 %v633_v19, 0.0  ;;  %v628_v22 = vadd.f32 %v2591_v5, %v627_v20  ;;  %2259 = vmatprep.mubr.msk.f32.mxu1 %vm990_vm1, %v928_v18 }
  0xdc   : > { %v2163_v23 = vpop.f32.mrf.mxu0  ;;  %2260 = vmatmul.mubr.msk.f32.vlgmr.msra.gmra.mxu1 %vm990_vm1, %v929_v15 }
  0xdd   : > { %996 = vst.msk [vmem:[%s2598_s18 + $0x28] sm:$0xff] %vm990_vm1, %v931_v21  ;;  %v930_v24 = vmax.f32 %v628_v22, 0.0  ;;  %v643_v25 = vadd.f32 %v2163_v23, %v2591_v5 }
  0xde   : > { %v637_v26 = vpop.f32.mrf.mxu0 }
  0xdf   : > { %995 = vst.msk [vmem:[%s2598_s18 + $0x20] sm:$0xff] %vm990_vm1, %v930_v24  ;;  %v933_v27 = vmax.f32 %v643_v25, 0.0  ;;  %v638_v28 = vadd.f32 %v2591_v5, %v637_v26  ;;  %2262 = vmatprep.mubr.msk.f32.mxu1 %vm990_vm1, %v930_v24 }
  0xe0   : > { %v2166_v29 = vpop.f32.mrf.mxu0  ;;  %2263 = vmatmul.mubr.msk.f32.gmra.mxu1 %vm990_vm1, %v931_v21 }
  0xe1   : > { %998 = vst.msk [vmem:[%s2598_s18 + $0x38] sm:$0xff] %vm990_vm1, %v933_v27  ;;  %v932_v30 = vmax.f32 %v638_v28, 0.0  ;;  %v653_v31 = vadd.f32 %v2166_v29, %v2591_v5 }
  0xe2   : > { %v647_v32 = vpop.f32.mrf.mxu0 }
  0xe3   : > { %997 = vst.msk [vmem:[%s2598_s18 + $0x30] sm:$0xff] %vm990_vm1, %v932_v30  ;;  %v935_v33 = vmax.f32 %v653_v31, 0.0  ;;  %v648_v34 = vadd.f32 %v2591_v5, %v647_v32  ;;  %2265 = vmatprep.mubr.msk.f32.mxu1 %vm990_vm1, %v932_v30 }
  0xe4   : > { %v2169_v35 = vpop.f32.mrf.mxu0  ;;  %2266 = vmatmul.mubr.msk.f32.gmra.mxu1 %vm990_vm1, %v933_v27 }
  0xe5   : > { %1000 = vst.msk [vmem:[%s2598_s18 + $0x48] sm:$0xff] %vm990_vm1, %v935_v33  ;;  %v934_v36 = vmax.f32 %v648_v34, 0.0  ;;  %v663_v37 = vadd.f32 %v2169_v35, %v2591_v5 }
  0xe6   : > { %v657_v38 = vpop.f32.mrf.mxu0 }
  0xe7   : > { %999 = vst.msk [vmem:[%s2598_s18 + $0x40] sm:$0xff] %vm990_vm1, %v934_v36  ;;  %v937_v39 = vmax.f32 %v663_v37, 0.0  ;;  %v658_v40 = vadd.f32 %v2591_v5, %v657_v38  ;;  %2268 = vmatprep.mubr.msk.f32.mxu1 %vm990_vm1, %v934_v36 }
  0xe8   : > { %v2172_v41 = vpop.f32.mrf.mxu0  ;;  %2269 = vmatmul.mubr.msk.f32.gmra.mxu1 %vm990_vm1, %v935_v33 }
  0xe9   : > { %1002 = vst.msk [vmem:[%s2598_s18 + $0x58] sm:$0xff] %vm990_vm1, %v937_v39  ;;  %v936_v42 = vmax.f32 %v658_v40, 0.0  ;;  %v673_v43 = vadd.f32 %v2172_v41, %v2591_v5 }
  0xea   : > { %v667_v44 = vpop.f32.mrf.mxu0 }
  0xeb   : > { %1001 = vst.msk [vmem:[%s2598_s18 + $0x50] sm:$0xff] %vm990_vm1, %v936_v42  ;;  %v939_v45 = vmax.f32 %v673_v43, 0.0  ;;  %v668_v46 = vadd.f32 %v2591_v5, %v667_v44  ;;  %2271 = vmatprep.mubr.msk.f32.mxu1 %vm990_vm1, %v936_v42 }
  0xec   : > { %v2175_v47 = vpop.f32.mrf.mxu0  ;;  %2272 = vmatmul.mubr.msk.f32.gmra.mxu1 %vm990_vm1, %v937_v39 }
  0xed   : > { %1004 = vst.msk [vmem:[%s2598_s18 + $0x68] sm:$0xff] %vm990_vm1, %v939_v45  ;;  %v938_v48 = vmax.f32 %v668_v46, 0.0  ;;  %v683_v49 = vadd.f32 %v2175_v47, %v2591_v5 }
  0xee   : > { %v677_v50 = vpop.f32.mrf.mxu0 }
  0xef   : > { %1003 = vst.msk [vmem:[%s2598_s18 + $0x60] sm:$0xff] %vm990_vm1, %v938_v48  ;;  %v941_v51 = vmax.f32 %v683_v49, 0.0  ;;  %v678_v52 = vadd.f32 %v2591_v5, %v677_v50  ;;  %2274 = vmatprep.mubr.msk.f32.mxu1 %vm990_vm1, %v938_v48 }
  0xf0   : > { %v2178_v53 = vpop.f32.mrf.mxu0  ;;  %2275 = vmatmul.mubr.msk.f32.gmra.mxu1 %vm990_vm1, %v939_v45 }
  0xf1   : > { %1006 = vst.msk [vmem:[%s2598_s18 + $0x78] sm:$0xff] %vm990_vm1, %v941_v51  ;;  %v940_v54 = vmax.f32 %v678_v52, 0.0  ;;  %v693_v55 = vadd.f32 %v2178_v53, %v2591_v5 }
  0xf2   : > { %v687_v56 = vpop.f32.mrf.mxu0 }
  0xf3   : > { %1005 = vst.msk [vmem:[%s2598_s18 + $0x70] sm:$0xff] %vm990_vm1, %v940_v54  ;;  %v943_v57 = vmax.f32 %v693_v55, 0.0  ;;  %v688_v58 = vadd.f32 %v2591_v5, %v687_v56  ;;  %2277 = vmatprep.mubr.msk.f32.mxu1 %vm990_vm1, %v940_v54 }
  0xf4   : > { %v2181_v59 = vpop.f32.mrf.mxu0  ;;  %2278 = vmatmul.mubr.msk.f32.gmra.mxu1 %vm990_vm1, %v941_v51 }
  0xf5   : > { %1008 = vst.msk [vmem:[%s2598_s18 + $0x88] sm:$0xff] %vm990_vm1, %v943_v57  ;;  %v942_v60 = vmax.f32 %v688_v58, 0.0  ;;  %v703_v61 = vadd.f32 %v2181_v59, %v2591_v5 }
  0xf6   : > { %v697_v62 = vpop.f32.mrf.mxu0 }
  0xf7   : > { %1007 = vst.msk [vmem:[%s2598_s18 + $0x80] sm:$0xff] %vm990_vm1, %v942_v60  ;;  %v945_v63 = vmax.f32 %v703_v61, 0.0  ;;  %v698_v0 = vadd.f32 %v2591_v5, %v697_v62  ;;  %2280 = vmatprep.mubr.msk.f32.mxu1 %vm990_vm1, %v942_v60 }
  0xf8   : > { %v2184_v1 = vpop.f32.mrf.mxu0  ;;  %2281 = vmatmul.mubr.msk.f32.gmra.mxu1 %vm990_vm1, %v943_v57 }
  0xf9   : > { %1010 = vst.msk [vmem:[%s2598_s18 + $0x98] sm:$0xff] %vm990_vm1, %v945_v63  ;;  %v944_v2 = vmax.f32 %v698_v0, 0.0  ;;  %v713_v3 = vadd.f32 %v2184_v1, %v2591_v5 }
  0xfa   : > { %v707_v4 = vpop.f32.mrf.mxu0 }
  0xfb   : > { %1009 = vst.msk [vmem:[%s2598_s18 + $0x90] sm:$0xff] %vm990_vm1, %v944_v2  ;;  %v947_v6 = vmax.f32 %v713_v3, 0.0  ;;  %v708_v7 = vadd.f32 %v2591_v5, %v707_v4  ;;  %2283 = vmatprep.mubr.msk.f32.mxu1 %vm990_vm1, %v944_v2 }
  0xfc   : > { %v2187_v8 = vpop.f32.mrf.mxu0  ;;  %2284 = vmatmul.mubr.msk.f32.gmra.mxu1 %vm990_vm1, %v945_v63 }
  0xfd   : > { %1012 = vst.msk [vmem:[%s2598_s18 + $0xa8] sm:$0xff] %vm990_vm1, %v947_v6  ;;  %v946_v9 = vmax.f32 %v708_v7, 0.0  ;;  %v723_v10 = vadd.f32 %v2187_v8, %v2591_v5 }
  0xfe   : > { %v717_v11 = vpop.f32.mrf.mxu0 }
  0xff   : > { %1011 = vst.msk [vmem:[%s2598_s18 + $0xa0] sm:$0xff] %vm990_vm1, %v946_v9  ;;  %v949_v12 = vmax.f32 %v723_v10, 0.0  ;;  %v718_v13 = vadd.f32 %v2591_v5, %v717_v11  ;;  %2286 = vmatprep.mubr.msk.f32.mxu1 %vm990_vm1, %v946_v9 }
 0x100   : > { %v2190_v14 = vpop.f32.mrf.mxu0  ;;  %2287 = vmatmul.mubr.msk.f32.gmra.mxu1 %vm990_vm1, %v947_v6 }
 0x101   : > { %1014 = vst.msk [vmem:[%s2598_s18 + $0xb8] sm:$0xff] %vm990_vm1, %v949_v12  ;;  %v948_v15 = vmax.f32 %v718_v13, 0.0  ;;  %v733_v16 = vadd.f32 %v2190_v14, %v2591_v5 }
 0x102   : > { %v727_v17 = vpop.f32.mrf.mxu0 }
 0x103   : > { %1013 = vst.msk [vmem:[%s2598_s18 + $0xb0] sm:$0xff] %vm990_vm1, %v948_v15  ;;  %v951_v18 = vmax.f32 %v733_v16, 0.0  ;;  %v728_v19 = vadd.f32 %v2591_v5, %v727_v17  ;;  %2289 = vmatprep.mubr.msk.f32.mxu1 %vm990_vm1, %v948_v15 }
 0x104   : > { %v2193_v20 = vpop.f32.mrf.mxu0  ;;  %2290 = vmatmul.mubr.msk.f32.gmra.mxu1 %vm990_vm1, %v949_v12 }
 0x105   : > { %1016 = vst.msk [vmem:[%s2598_s18 + $0xc8] sm:$0xff] %vm990_vm1, %v951_v18  ;;  %v950_v21 = vmax.f32 %v728_v19, 0.0  ;;  %v743_v22 = vadd.f32 %v2193_v20, %v2591_v5 }
 0x106   : > { %v737_v23 = vpop.f32.mrf.mxu0 }
 0x107   : > { %1015 = vst.msk [vmem:[%s2598_s18 + $0xc0] sm:$0xff] %vm990_vm1, %v950_v21  ;;  %v953_v24 = vmax.f32 %v743_v22, 0.0  ;;  %v738_v25 = vadd.f32 %v2591_v5, %v737_v23  ;;  %2292 = vmatprep.mubr.msk.f32.mxu1 %vm990_vm1, %v950_v21 }
 0x108   : > { %v2196_v26 = vpop.f32.mrf.mxu0  ;;  %2293 = vmatmul.mubr.msk.f32.gmra.mxu1 %vm990_vm1, %v951_v18 }
 0x109   : > { %1018 = vst.msk [vmem:[%s2598_s18 + $0xd8] sm:$0xff] %vm990_vm1, %v953_v24  ;;  %v952_v27 = vmax.f32 %v738_v25, 0.0  ;;  %v753_v28 = vadd.f32 %v2196_v26, %v2591_v5 }
 0x10a   : > { %v747_v29 = vpop.f32.mrf.mxu0 }
 0x10b   : > { %1017 = vst.msk [vmem:[%s2598_s18 + $0xd0] sm:$0xff] %vm990_vm1, %v952_v27  ;;  %v955_v30 = vmax.f32 %v753_v28, 0.0  ;;  %v748_v31 = vadd.f32 %v2591_v5, %v747_v29  ;;  %2295 = vmatprep.mubr.msk.f32.mxu1 %vm990_vm1, %v952_v27 }
 0x10c   : > { %v2199_v32 = vpop.f32.mrf.mxu0  ;;  %2296 = vmatmul.mubr.msk.f32.gmra.mxu1 %vm990_vm1, %v953_v24 }
 0x10d   : > { %1020 = vst.msk [vmem:[%s2598_s18 + $0xe8] sm:$0xff] %vm990_vm1, %v955_v30  ;;  %v954_v33 = vmax.f32 %v748_v31, 0.0  ;;  %v763_v34 = vadd.f32 %v2199_v32, %v2591_v5 }
 0x10e   : > { %v757_v35 = vpop.f32.mrf.mxu0 }
 0x10f   : > { %1019 = vst.msk [vmem:[%s2598_s18 + $0xe0] sm:$0xff] %vm990_vm1, %v954_v33  ;;  %v957_v36 = vmax.f32 %v763_v34, 0.0  ;;  %v758_v37 = vadd.f32 %v2591_v5, %v757_v35  ;;  %2298 = vmatprep.mubr.msk.f32.mxu1 %vm990_vm1, %v954_v33 }
 0x110   : > { %v2202_v38 = vpop.f32.mrf.mxu0  ;;  %2299 = vmatmul.mubr.msk.f32.gmra.mxu1 %vm990_vm1, %v955_v30 }
 0x111   : > { %1022 = vst.msk [vmem:[%s2598_s18 + $0xf8] sm:$0xff] %vm990_vm1, %v957_v36  ;;  %v956_v39 = vmax.f32 %v758_v37, 0.0  ;;  %v773_v40 = vadd.f32 %v2202_v38, %v2591_v5 }
 0x112   : > { %v767_v41 = vpop.f32.mrf.mxu0 }
 0x113   : > { %1021 = vst.msk [vmem:[%s2598_s18 + $0xf0] sm:$0xff] %vm990_vm1, %v956_v39  ;;  %v959_v42 = vmax.f32 %v773_v40, 0.0  ;;  %v768_v43 = vadd.f32 %v2591_v5, %v767_v41  ;;  %2301 = vmatprep.mubr.msk.f32.mxu1 %vm990_vm1, %v956_v39 }
 0x114   : > { %v2205_v44 = vpop.f32.mrf.mxu0  ;;  %2302 = vmatmul.mubr.msk.f32.gmra.mxu1 %vm990_vm1, %v957_v36 }
 0x115   : > { %1024 = vst.msk [vmem:[%s2598_s18 + $0x108] sm:$0xff] %vm990_vm1, %v959_v42  ;;  %v958_v45 = vmax.f32 %v768_v43, 0.0  ;;  %v783_v46 = vadd.f32 %v2205_v44, %v2591_v5 }
 0x116   : > { %v777_v47 = vpop.f32.mrf.mxu0 }
 0x117   : > { %1023 = vst.msk [vmem:[%s2598_s18 + $0x100] sm:$0xff] %vm990_vm1, %v958_v45  ;;  %v961_v48 = vmax.f32 %v783_v46, 0.0  ;;  %v778_v49 = vadd.f32 %v2591_v5, %v777_v47  ;;  %2304 = vmatprep.mubr.msk.f32.mxu1 %vm990_vm1, %v958_v45 }
 0x118   : > { %v2208_v50 = vpop.f32.mrf.mxu0  ;;  %2305 = vmatmul.mubr.msk.f32.gmra.mxu1 %vm990_vm1, %v959_v42 }
 0x119   : > { %1026 = vst.msk [vmem:[%s2598_s18 + $0x118] sm:$0xff] %vm990_vm1, %v961_v48  ;;  %v960_v51 = vmax.f32 %v778_v49, 0.0  ;;  %v793_v52 = vadd.f32 %v2208_v50, %v2591_v5 }
 0x11a   : > { %v787_v53 = vpop.f32.mrf.mxu0 }
 0x11b   : > { %1025 = vst.msk [vmem:[%s2598_s18 + $0x110] sm:$0xff] %vm990_vm1, %v960_v51  ;;  %v963_v54 = vmax.f32 %v793_v52, 0.0  ;;  %v788_v55 = vadd.f32 %v2591_v5, %v787_v53  ;;  %2307 = vmatprep.mubr.msk.f32.mxu1 %vm990_vm1, %v960_v51 }
 0x11c   : > { %v2211_v56 = vpop.f32.mrf.mxu0  ;;  %2308 = vmatmul.mubr.msk.f32.gmra.mxu1 %vm990_vm1, %v961_v48 }
 0x11d   : > { %1028 = vst.msk [vmem:[%s2598_s18 + $0x128] sm:$0xff] %vm990_vm1, %v963_v54  ;;  %v962_v57 = vmax.f32 %v788_v55, 0.0  ;;  %v803_v58 = vadd.f32 %v2211_v56, %v2591_v5 }
 0x11e   : > { %v797_v59 = vpop.f32.mrf.mxu0 }
 0x11f   : > { %1027 = vst.msk [vmem:[%s2598_s18 + $0x120] sm:$0xff] %vm990_vm1, %v962_v57  ;;  %v965_v60 = vmax.f32 %v803_v58, 0.0  ;;  %v798_v61 = vadd.f32 %v2591_v5, %v797_v59  ;;  %2310 = vmatprep.mubr.msk.f32.mxu1 %vm990_vm1, %v962_v57 }
 0x120   : > { %v2214_v62 = vpop.f32.mrf.mxu0  ;;  %2311 = vmatmul.mubr.msk.f32.gmra.mxu1 %vm990_vm1, %v963_v54 }
 0x121   : > { %1030 = vst.msk [vmem:[%s2598_s18 + $0x138] sm:$0xff] %vm990_vm1, %v965_v60  ;;  %v964_v63 = vmax.f32 %v798_v61, 0.0  ;;  %v813_v0 = vadd.f32 %v2214_v62, %v2591_v5 }
 0x122   : > { %v807_v1 = vpop.f32.mrf.mxu0 }
 0x123   : > { %1029 = vst.msk [vmem:[%s2598_s18 + $0x130] sm:$0xff] %vm990_vm1, %v964_v63  ;;  %v967_v2 = vmax.f32 %v813_v0, 0.0  ;;  %v808_v3 = vadd.f32 %v2591_v5, %v807_v1  ;;  %2313 = vmatprep.mubr.msk.f32.mxu1 %vm990_vm1, %v964_v63 }
 0x124   : > { %v2217_v4 = vpop.f32.mrf.mxu0  ;;  %2314 = vmatmul.mubr.msk.f32.gmra.mxu1 %vm990_vm1, %v965_v60 }
 0x125   : > { %1032 = vst.msk [vmem:[%s2598_s18 + $0x148] sm:$0xff] %vm990_vm1, %v967_v2  ;;  %v966_v6 = vmax.f32 %v808_v3, 0.0  ;;  %v823_v7 = vadd.f32 %v2217_v4, %v2591_v5 }
 0x126   : > { %v817_v8 = vpop.f32.mrf.mxu0 }
 0x127   : > { %1031 = vst.msk [vmem:[%s2598_s18 + $0x140] sm:$0xff] %vm990_vm1, %v966_v6  ;;  %v969_v9 = vmax.f32 %v823_v7, 0.0  ;;  %v818_v10 = vadd.f32 %v2591_v5, %v817_v8  ;;  %2316 = vmatprep.mubr.msk.f32.mxu1 %vm990_vm1, %v966_v6 }
 0x128   : > { %v2220_v11 = vpop.f32.mrf.mxu0  ;;  %2317 = vmatmul.mubr.msk.f32.gmra.mxu1 %vm990_vm1, %v967_v2 }
 0x129   : > { %1034 = vst.msk [vmem:[%s2598_s18 + $0x158] sm:$0xff] %vm990_vm1, %v969_v9  ;;  %v968_v12 = vmax.f32 %v818_v10, 0.0  ;;  %v833_v13 = vadd.f32 %v2220_v11, %v2591_v5 }
 0x12a   : > { %v827_v14 = vpop.f32.mrf.mxu0 }
 0x12b   : > { %1033 = vst.msk [vmem:[%s2598_s18 + $0x150] sm:$0xff] %vm990_vm1, %v968_v12  ;;  %v971_v15 = vmax.f32 %v833_v13, 0.0  ;;  %v828_v16 = vadd.f32 %v2591_v5, %v827_v14  ;;  %2319 = vmatprep.mubr.msk.f32.mxu1 %vm990_vm1, %v968_v12 }
 0x12c   : > { %v2223_v17 = vpop.f32.mrf.mxu0  ;;  %2320 = vmatmul.mubr.msk.f32.gmra.mxu1 %vm990_vm1, %v969_v9  ;;  %v2858_v9 = vld [vmem:[%s3065_s4] ss:$0 sm:$0xff] }
 0x12d   : > { %1036 = vst.msk [vmem:[%s2598_s18 + $0x168] sm:$0xff] %vm990_vm1, %v971_v15  ;;  %v970_v18 = vmax.f32 %v828_v16, 0.0  ;;  %v843_v19 = vadd.f32 %v2223_v17, %v2591_v5 }
 0x12e   : > { %v837_v20 = vpop.f32.mrf.mxu0 }
 0x12f   : > { %1035 = vst.msk [vmem:[%s2598_s18 + $0x160] sm:$0xff] %vm990_vm1, %v970_v18  ;;  %v973_v21 = vmax.f32 %v843_v19, 0.0  ;;  %v838_v22 = vadd.f32 %v2591_v5, %v837_v20  ;;  %2322 = vmatprep.mubr.msk.f32.mxu1 %vm990_vm1, %v970_v18 }
 0x130   : > { %v2226_v23 = vpop.f32.mrf.mxu0  ;;  %2323 = vmatmul.mubr.msk.f32.gmra.mxu1 %vm990_vm1, %v971_v15 }
 0x131   : > { %1038 = vst.msk [vmem:[%s2598_s18 + $0x178] sm:$0xff] %vm990_vm1, %v973_v21  ;;  %v972_v24 = vmax.f32 %v838_v22, 0.0  ;;  %v853_v25 = vadd.f32 %v2226_v23, %v2591_v5 }
 0x132   : > { %v847_v26 = vpop.f32.mrf.mxu0 }
 0x133   : > { %1037 = vst.msk [vmem:[%s2598_s18 + $0x170] sm:$0xff] %vm990_vm1, %v972_v24  ;;  %v975_v27 = vmax.f32 %v853_v25, 0.0  ;;  %v848_v28 = vadd.f32 %v2591_v5, %v847_v26  ;;  %2325 = vmatprep.mubr.msk.f32.mxu1 %vm990_vm1, %v972_v24 }
 0x134   : > { %v2229_v29 = vpop.f32.mrf.mxu0  ;;  %2326 = vmatmul.mubr.msk.f32.gmra.mxu1 %vm990_vm1, %v973_v21 }
 0x135   : > { %1040 = vst.msk [vmem:[%s2598_s18 + $0x188] sm:$0xff] %vm990_vm1, %v975_v27  ;;  %v974_v30 = vmax.f32 %v848_v28, 0.0  ;;  %v863_v31 = vadd.f32 %v2229_v29, %v2591_v5 }
 0x136   : > { %v857_v32 = vpop.f32.mrf.mxu0 }
 0x137   : > { %1039 = vst.msk [vmem:[%s2598_s18 + $0x180] sm:$0xff] %vm990_vm1, %v974_v30  ;;  %v977_v33 = vmax.f32 %v863_v31, 0.0  ;;  %v858_v34 = vadd.f32 %v2591_v5, %v857_v32  ;;  %2328 = vmatprep.mubr.msk.f32.mxu1 %vm990_vm1, %v974_v30 }
 0x138   : > { %v2232_v35 = vpop.f32.mrf.mxu0  ;;  %2329 = vmatmul.mubr.msk.f32.gmra.mxu1 %vm990_vm1, %v975_v27 }
 0x139   : > { %1042 = vst.msk [vmem:[%s2598_s18 + $0x198] sm:$0xff] %vm990_vm1, %v977_v33  ;;  %v976_v36 = vmax.f32 %v858_v34, 0.0  ;;  %v873_v37 = vadd.f32 %v2232_v35, %v2591_v5 }
 0x13a   : > { %v867_v38 = vpop.f32.mrf.mxu0 }
 0x13b   : > { %1041 = vst.msk [vmem:[%s2598_s18 + $0x190] sm:$0xff] %vm990_vm1, %v976_v36  ;;  %v979_v39 = vmax.f32 %v873_v37, 0.0  ;;  %v868_v40 = vadd.f32 %v2591_v5, %v867_v38  ;;  %2331 = vmatprep.mubr.msk.f32.mxu1 %vm990_vm1, %v976_v36 }
 0x13c   : > { %v2235_v41 = vpop.f32.mrf.mxu0  ;;  %2332 = vmatmul.mubr.msk.f32.gmra.mxu1 %vm990_vm1, %v977_v33 }
 0x13d   : > { %1044 = vst.msk [vmem:[%s2598_s18 + $0x1a8] sm:$0xff] %vm990_vm1, %v979_v39  ;;  %v978_v42 = vmax.f32 %v868_v40, 0.0  ;;  %v883_v43 = vadd.f32 %v2235_v41, %v2591_v5 }
 0x13e   : > { %v877_v44 = vpop.f32.mrf.mxu0 }
 0x13f   : > { %1043 = vst.msk [vmem:[%s2598_s18 + $0x1a0] sm:$0xff] %vm990_vm1, %v978_v42  ;;  %v981_v45 = vmax.f32 %v883_v43, 0.0  ;;  %v878_v46 = vadd.f32 %v2591_v5, %v877_v44  ;;  %2334 = vmatprep.mubr.msk.f32.mxu1 %vm990_vm1, %v978_v42 }
 0x140   : > { %v2238_v47 = vpop.f32.mrf.mxu0  ;;  %2335 = vmatmul.mubr.msk.f32.gmra.mxu1 %vm990_vm1, %v979_v39 }
 0x141   : > { %1046 = vst.msk [vmem:[%s2598_s18 + $0x1b8] sm:$0xff] %vm990_vm1, %v981_v45  ;;  %v980_v48 = vmax.f32 %v878_v46, 0.0  ;;  %v893_v49 = vadd.f32 %v2238_v47, %v2591_v5 }
 0x142   : > { %v887_v50 = vpop.f32.mrf.mxu0 }
 0x143   : > { %1045 = vst.msk [vmem:[%s2598_s18 + $0x1b0] sm:$0xff] %vm990_vm1, %v980_v48  ;;  %v983_v51 = vmax.f32 %v893_v49, 0.0  ;;  %v888_v52 = vadd.f32 %v2591_v5, %v887_v50  ;;  %2337 = vmatprep.mubr.msk.f32.mxu1 %vm990_vm1, %v980_v48 }
 0x144   : > { %v2241_v53 = vpop.f32.mrf.mxu0  ;;  %2338 = vmatmul.mubr.msk.f32.gmra.mxu1 %vm990_vm1, %v981_v45 }
 0x145   : > { %1048 = vst.msk [vmem:[%s2598_s18 + $0x1c8] sm:$0xff] %vm990_vm1, %v983_v51  ;;  %v982_v54 = vmax.f32 %v888_v52, 0.0  ;;  %v903_v55 = vadd.f32 %v2241_v53, %v2591_v5 }
 0x146   : > { %v897_v56 = vpop.f32.mrf.mxu0 }
 0x147   : > { %1047 = vst.msk [vmem:[%s2598_s18 + $0x1c0] sm:$0xff] %vm990_vm1, %v982_v54  ;;  %v985_v57 = vmax.f32 %v903_v55, 0.0  ;;  %v898_v58 = vadd.f32 %v2591_v5, %v897_v56  ;;  %2340 = vmatprep.mubr.msk.f32.mxu1 %vm990_vm1, %v982_v54 }
 0x148   : > { %v2244_v59 = vpop.f32.mrf.mxu0  ;;  %2341 = vmatmul.mubr.msk.f32.gmra.mxu1 %vm990_vm1, %v983_v51 }
 0x149   : > { %1050 = vst.msk [vmem:[%s2598_s18 + $0x1d8] sm:$0xff] %vm990_vm1, %v985_v57  ;;  %v984_v60 = vmax.f32 %v898_v58, 0.0  ;;  %v913_v61 = vadd.f32 %v2244_v59, %v2591_v5 }
 0x14a   : > { %v907_v62 = vpop.f32.mrf.mxu0 }
 0x14b   : > { %1049 = vst.msk [vmem:[%s2598_s18 + $0x1d0] sm:$0xff] %vm990_vm1, %v984_v60  ;;  %v987_v63 = vmax.f32 %v913_v61, 0.0  ;;  %v908_v0 = vadd.f32 %v2591_v5, %v907_v62  ;;  %2343 = vmatprep.mubr.msk.f32.mxu1 %vm990_vm1, %v984_v60 }
 0x14c   : > { %v2247_v1 = vpop.f32.mrf.mxu0  ;;  %2344 = vmatmul.mubr.msk.f32.gmra.mxu1 %vm990_vm1, %v985_v57 }
 0x14d   : > { %1052 = vst.msk [vmem:[%s2598_s18 + $0x1e8] sm:$0xff] %vm990_vm1, %v987_v63  ;;  %v986_v2 = vmax.f32 %v908_v0, 0.0  ;;  %v923_v3 = vadd.f32 %v2247_v1, %v2591_v5 }
 0x14e   : > { %v917_v4 = vpop.f32.mrf.mxu0 }
 0x14f   : > { %1051 = vst.msk [vmem:[%s2598_s18 + $0x1e0] sm:$0xff] %vm990_vm1, %v986_v2  ;;  %v989_v6 = vmax.f32 %v923_v3, 0.0  ;;  %v918_v7 = vadd.f32 %v2591_v5, %v917_v4  ;;  %2346 = vmatprep.mubr.msk.f32.mxu1 %vm990_vm1, %v986_v2 }
 0x150   : > { %2347 = vmatmul.mubr.msk.f32.gmra.mxu1 %vm990_vm1, %v987_v63 }
 0x151   : > { %1054 = vst.msk [vmem:[%s2598_s18 + $0x1f8] sm:$0xff] %vm990_vm1, %v989_v6  ;;  %v988_v8 = vmax.f32 %v918_v7, 0.0 }
 0x153   : > { %1053 = vst.msk [vmem:[%s2598_s18 + $0x1f0] sm:$0xff] %vm990_vm1, %v988_v8  ;;  %2349 = vmatprep.mubr.msk.f32.mxu1 %vm990_vm1, %v988_v8 }
 0x154   : > { %2350 = vmatmul.mubr.msk.f32.gmra.mxu1 %vm990_vm1, %v989_v6 }
 0x198   : > { %v2258_v10 = vpop.f32.mrf.mxu0 }
 0x199   : > { %v1338_v5 = vadd.f32 %v2258_v10, %v2858_v9 }
 0x19a   : > { %v1332_v11 = vpop.f32.mrf.mxu0 }
 0x19b   : > { %v1652_v12 = vmax.f32 %v1338_v5, 0.0  ;;  %v1333_v13 = vadd.f32 %v2858_v9, %v1332_v11 }
 0x19c   : > { %v2261_v14 = vpop.f32.mrf.mxu1 }
 0x19d   : > { %1716 = vst.msk [vmem:[%s2865_s24 + $0x8] sm:$0xff] %vm345_vm0, %v1652_v12  ;;  %v1651_v15 = vmax.f32 %v1333_v13, 0.0  ;;  %v1348_v16 = vadd.f32 %v2261_v14, %v2858_v9 }
 0x19e   : > { %v1342_v17 = vpop.f32.mrf.mxu1 }
 0x19f   : > { %1715 = vst.msk [vmem:[%s2865_s24] sm:$0xff] %vm345_vm0, %v1651_v15  ;;  %v1654_v18 = vmax.f32 %v1348_v16, 0.0  ;;  %v1343_v19 = vadd.f32 %v2858_v9, %v1342_v17 }
 0x1a0   : > { %v2264_v20 = vpop.f32.mrf.mxu1 }
 0x1a1   : > { %1718 = vst.msk [vmem:[%s2865_s24 + $0x18] sm:$0xff] %vm345_vm0, %v1654_v18  ;;  %v1653_v21 = vmax.f32 %v1343_v19, 0.0  ;;  %v1358_v22 = vadd.f32 %v2264_v20, %v2858_v9 }
 0x1a2   : > { %v1352_v23 = vpop.f32.mrf.mxu1 }
 0x1a3   : > { %1717 = vst.msk [vmem:[%s2865_s24 + $0x10] sm:$0xff] %vm345_vm0, %v1653_v21  ;;  %v1656_v24 = vmax.f32 %v1358_v22, 0.0  ;;  %v1353_v25 = vadd.f32 %v2858_v9, %v1352_v23 }
 0x1a4   : > { %v2267_v26 = vpop.f32.mrf.mxu1 }
 0x1a5   : > { %1720 = vst.msk [vmem:[%s2865_s24 + $0x28] sm:$0xff] %vm345_vm0, %v1656_v24  ;;  %v1655_v27 = vmax.f32 %v1353_v25, 0.0  ;;  %v1368_v28 = vadd.f32 %v2267_v26, %v2858_v9 }
 0x1a6   : > { %v1362_v29 = vpop.f32.mrf.mxu1 }
 0x1a7   : > { %1719 = vst.msk [vmem:[%s2865_s24 + $0x20] sm:$0xff] %vm345_vm0, %v1655_v27  ;;  %v1658_v30 = vmax.f32 %v1368_v28, 0.0  ;;  %v1363_v31 = vadd.f32 %v2858_v9, %v1362_v29 }
 0x1a8   : > { %v2270_v32 = vpop.f32.mrf.mxu1 }
 0x1a9   : > { %1722 = vst.msk [vmem:[%s2865_s24 + $0x38] sm:$0xff] %vm345_vm0, %v1658_v30  ;;  %v1657_v33 = vmax.f32 %v1363_v31, 0.0  ;;  %v1378_v34 = vadd.f32 %v2270_v32, %v2858_v9 }
 0x1aa   : > { %v1372_v35 = vpop.f32.mrf.mxu1 }
 0x1ab   : > { %1721 = vst.msk [vmem:[%s2865_s24 + $0x30] sm:$0xff] %vm345_vm0, %v1657_v33  ;;  %v1660_v36 = vmax.f32 %v1378_v34, 0.0  ;;  %v1373_v37 = vadd.f32 %v2858_v9, %v1372_v35 }
 0x1ac   : > { %v2273_v38 = vpop.f32.mrf.mxu1 }
 0x1ad   : > { %1724 = vst.msk [vmem:[%s2865_s24 + $0x48] sm:$0xff] %vm345_vm0, %v1660_v36  ;;  %v1659_v39 = vmax.f32 %v1373_v37, 0.0  ;;  %v1388_v40 = vadd.f32 %v2273_v38, %v2858_v9 }
 0x1ae   : > { %v1382_v41 = vpop.f32.mrf.mxu1 }
 0x1af   : > { %1723 = vst.msk [vmem:[%s2865_s24 + $0x40] sm:$0xff] %vm345_vm0, %v1659_v39  ;;  %v1662_v42 = vmax.f32 %v1388_v40, 0.0  ;;  %v1383_v43 = vadd.f32 %v2858_v9, %v1382_v41 }
 0x1b0   : > { %v2276_v44 = vpop.f32.mrf.mxu1 }
 0x1b1   : > { %1726 = vst.msk [vmem:[%s2865_s24 + $0x58] sm:$0xff] %vm345_vm0, %v1662_v42  ;;  %v1661_v45 = vmax.f32 %v1383_v43, 0.0  ;;  %v1398_v46 = vadd.f32 %v2276_v44, %v2858_v9 }
 0x1b2   : > { %v1392_v47 = vpop.f32.mrf.mxu1 }
 0x1b3   : > { %1725 = vst.msk [vmem:[%s2865_s24 + $0x50] sm:$0xff] %vm345_vm0, %v1661_v45  ;;  %v1664_v48 = vmax.f32 %v1398_v46, 0.0  ;;  %v1393_v49 = vadd.f32 %v2858_v9, %v1392_v47 }
 0x1b4   : > { %v2279_v50 = vpop.f32.mrf.mxu1 }
 0x1b5   : > { %1728 = vst.msk [vmem:[%s2865_s24 + $0x68] sm:$0xff] %vm345_vm0, %v1664_v48  ;;  %v1663_v51 = vmax.f32 %v1393_v49, 0.0  ;;  %v1408_v52 = vadd.f32 %v2279_v50, %v2858_v9 }
 0x1b6   : > { %v1402_v53 = vpop.f32.mrf.mxu1 }
 0x1b7   : > { %1727 = vst.msk [vmem:[%s2865_s24 + $0x60] sm:$0xff] %vm345_vm0, %v1663_v51  ;;  %v1666_v54 = vmax.f32 %v1408_v52, 0.0  ;;  %v1403_v55 = vadd.f32 %v2858_v9, %v1402_v53 }
 0x1b8   : > { %v2282_v56 = vpop.f32.mrf.mxu1 }
 0x1b9   : > { %1730 = vst.msk [vmem:[%s2865_s24 + $0x78] sm:$0xff] %vm345_vm0, %v1666_v54  ;;  %v1665_v57 = vmax.f32 %v1403_v55, 0.0  ;;  %v1418_v58 = vadd.f32 %v2282_v56, %v2858_v9 }
 0x1ba   : > { %v1412_v59 = vpop.f32.mrf.mxu1 }
 0x1bb   : > { %1729 = vst.msk [vmem:[%s2865_s24 + $0x70] sm:$0xff] %vm345_vm0, %v1665_v57  ;;  %v1668_v60 = vmax.f32 %v1418_v58, 0.0  ;;  %v1413_v61 = vadd.f32 %v2858_v9, %v1412_v59 }
 0x1bc   : > { %v2285_v62 = vpop.f32.mrf.mxu1 }
 0x1bd   : > { %1732 = vst.msk [vmem:[%s2865_s24 + $0x88] sm:$0xff] %vm345_vm0, %v1668_v60  ;;  %v1667_v63 = vmax.f32 %v1413_v61, 0.0  ;;  %v1428_v0 = vadd.f32 %v2285_v62, %v2858_v9 }
 0x1be   : > { %v1422_v1 = vpop.f32.mrf.mxu1 }
 0x1bf   : > { %1731 = vst.msk [vmem:[%s2865_s24 + $0x80] sm:$0xff] %vm345_vm0, %v1667_v63  ;;  %v1670_v2 = vmax.f32 %v1428_v0, 0.0  ;;  %v1423_v3 = vadd.f32 %v2858_v9, %v1422_v1 }
 0x1c0   : > { %v2288_v4 = vpop.f32.mrf.mxu1 }
 0x1c1   : > { %1734 = vst.msk [vmem:[%s2865_s24 + $0x98] sm:$0xff] %vm345_vm0, %v1670_v2  ;;  %v1669_v6 = vmax.f32 %v1423_v3, 0.0  ;;  %v1438_v7 = vadd.f32 %v2288_v4, %v2858_v9 }
 0x1c2   : > { %v1432_v8 = vpop.f32.mrf.mxu1 }
 0x1c3   : > { %1733 = vst.msk [vmem:[%s2865_s24 + $0x90] sm:$0xff] %vm345_vm0, %v1669_v6  ;;  %v1672_v10 = vmax.f32 %v1438_v7, 0.0  ;;  %v1433_v5 = vadd.f32 %v2858_v9, %v1432_v8 }
 0x1c4   : > { %v2291_v11 = vpop.f32.mrf.mxu1 }
 0x1c5   : > { %1736 = vst.msk [vmem:[%s2865_s24 + $0xa8] sm:$0xff] %vm345_vm0, %v1672_v10  ;;  %v1671_v12 = vmax.f32 %v1433_v5, 0.0  ;;  %v1448_v13 = vadd.f32 %v2291_v11, %v2858_v9 }
 0x1c6   : > { %v1442_v14 = vpop.f32.mrf.mxu1 }
 0x1c7   : > { %1735 = vst.msk [vmem:[%s2865_s24 + $0xa0] sm:$0xff] %vm345_vm0, %v1671_v12  ;;  %v1674_v15 = vmax.f32 %v1448_v13, 0.0  ;;  %v1443_v16 = vadd.f32 %v2858_v9, %v1442_v14 }
 0x1c8   : > { %v2294_v17 = vpop.f32.mrf.mxu1 }
 0x1c9   : > { %1738 = vst.msk [vmem:[%s2865_s24 + $0xb8] sm:$0xff] %vm345_vm0, %v1674_v15  ;;  %v1673_v18 = vmax.f32 %v1443_v16, 0.0  ;;  %v1458_v19 = vadd.f32 %v2294_v17, %v2858_v9 }
 0x1ca   : > { %v1452_v20 = vpop.f32.mrf.mxu1 }
 0x1cb   : > { %1737 = vst.msk [vmem:[%s2865_s24 + $0xb0] sm:$0xff] %vm345_vm0, %v1673_v18  ;;  %v1676_v21 = vmax.f32 %v1458_v19, 0.0  ;;  %v1453_v22 = vadd.f32 %v2858_v9, %v1452_v20 }
 0x1cc   : > { %v2297_v23 = vpop.f32.mrf.mxu1 }
 0x1cd   : > { %1740 = vst.msk [vmem:[%s2865_s24 + $0xc8] sm:$0xff] %vm345_vm0, %v1676_v21  ;;  %v1675_v24 = vmax.f32 %v1453_v22, 0.0  ;;  %v1468_v25 = vadd.f32 %v2297_v23, %v2858_v9 }
 0x1ce   : > { %v1462_v26 = vpop.f32.mrf.mxu1 }
 0x1cf   : > { %1739 = vst.msk [vmem:[%s2865_s24 + $0xc0] sm:$0xff] %vm345_vm0, %v1675_v24  ;;  %v1678_v27 = vmax.f32 %v1468_v25, 0.0  ;;  %v1463_v28 = vadd.f32 %v2858_v9, %v1462_v26 }
 0x1d0   : > { %v2300_v29 = vpop.f32.mrf.mxu1 }
 0x1d1   : > { %1742 = vst.msk [vmem:[%s2865_s24 + $0xd8] sm:$0xff] %vm345_vm0, %v1678_v27  ;;  %v1677_v30 = vmax.f32 %v1463_v28, 0.0  ;;  %v1478_v31 = vadd.f32 %v2300_v29, %v2858_v9 }
 0x1d2   : > { %v1472_v32 = vpop.f32.mrf.mxu1 }
 0x1d3   : > { %1741 = vst.msk [vmem:[%s2865_s24 + $0xd0] sm:$0xff] %vm345_vm0, %v1677_v30  ;;  %v1680_v33 = vmax.f32 %v1478_v31, 0.0  ;;  %v1473_v34 = vadd.f32 %v2858_v9, %v1472_v32 }
 0x1d4   : > { %v2303_v35 = vpop.f32.mrf.mxu1 }
 0x1d5   : > { %1744 = vst.msk [vmem:[%s2865_s24 + $0xe8] sm:$0xff] %vm345_vm0, %v1680_v33  ;;  %v1679_v36 = vmax.f32 %v1473_v34, 0.0  ;;  %v1488_v37 = vadd.f32 %v2303_v35, %v2858_v9 }
 0x1d6   : > { %v1482_v38 = vpop.f32.mrf.mxu1 }
 0x1d7   : > { %1743 = vst.msk [vmem:[%s2865_s24 + $0xe0] sm:$0xff] %vm345_vm0, %v1679_v36  ;;  %v1682_v39 = vmax.f32 %v1488_v37, 0.0  ;;  %v1483_v40 = vadd.f32 %v2858_v9, %v1482_v38 }
 0x1d8   : > { %v2306_v41 = vpop.f32.mrf.mxu1 }
 0x1d9   : > { %1746 = vst.msk [vmem:[%s2865_s24 + $0xf8] sm:$0xff] %vm345_vm0, %v1682_v39  ;;  %v1681_v42 = vmax.f32 %v1483_v40, 0.0  ;;  %v1498_v43 = vadd.f32 %v2306_v41, %v2858_v9 }
 0x1da   : > { %v1492_v44 = vpop.f32.mrf.mxu1 }
 0x1db   : > { %1745 = vst.msk [vmem:[%s2865_s24 + $0xf0] sm:$0xff] %vm345_vm0, %v1681_v42  ;;  %v1684_v45 = vmax.f32 %v1498_v43, 0.0  ;;  %v1493_v46 = vadd.f32 %v2858_v9, %v1492_v44 }
 0x1dc   : > { %v2309_v47 = vpop.f32.mrf.mxu1 }
 0x1dd   : > { %1748 = vst.msk [vmem:[%s2865_s24 + $0x108] sm:$0xff] %vm345_vm0, %v1684_v45  ;;  %v1683_v48 = vmax.f32 %v1493_v46, 0.0  ;;  %v1508_v49 = vadd.f32 %v2309_v47, %v2858_v9 }
 0x1de   : > { %v1502_v50 = vpop.f32.mrf.mxu1 }
 0x1df   : > { %1747 = vst.msk [vmem:[%s2865_s24 + $0x100] sm:$0xff] %vm345_vm0, %v1683_v48  ;;  %v1686_v51 = vmax.f32 %v1508_v49, 0.0  ;;  %v1503_v52 = vadd.f32 %v2858_v9, %v1502_v50 }
 0x1e0   : > { %v2312_v53 = vpop.f32.mrf.mxu1 }
 0x1e1   : > { %1750 = vst.msk [vmem:[%s2865_s24 + $0x118] sm:$0xff] %vm345_vm0, %v1686_v51  ;;  %v1685_v54 = vmax.f32 %v1503_v52, 0.0  ;;  %v1518_v55 = vadd.f32 %v2312_v53, %v2858_v9 }
 0x1e2   : > { %v1512_v56 = vpop.f32.mrf.mxu1 }
 0x1e3   : > { %1749 = vst.msk [vmem:[%s2865_s24 + $0x110] sm:$0xff] %vm345_vm0, %v1685_v54  ;;  %v1688_v57 = vmax.f32 %v1518_v55, 0.0  ;;  %v1513_v58 = vadd.f32 %v2858_v9, %v1512_v56 }
 0x1e4   : > { %v2315_v59 = vpop.f32.mrf.mxu1 }
 0x1e5   : > { %1752 = vst.msk [vmem:[%s2865_s24 + $0x128] sm:$0xff] %vm345_vm0, %v1688_v57  ;;  %v1687_v60 = vmax.f32 %v1513_v58, 0.0  ;;  %v1528_v61 = vadd.f32 %v2315_v59, %v2858_v9 }
 0x1e6   : > { %v1522_v62 = vpop.f32.mrf.mxu1 }
 0x1e7   : > { %1751 = vst.msk [vmem:[%s2865_s24 + $0x120] sm:$0xff] %vm345_vm0, %v1687_v60  ;;  %v1690_v63 = vmax.f32 %v1528_v61, 0.0  ;;  %v1523_v0 = vadd.f32 %v2858_v9, %v1522_v62 }
 0x1e8   : > { %v2318_v1 = vpop.f32.mrf.mxu1 }
 0x1e9   : > { %1754 = vst.msk [vmem:[%s2865_s24 + $0x138] sm:$0xff] %vm345_vm0, %v1690_v63  ;;  %v1689_v2 = vmax.f32 %v1523_v0, 0.0  ;;  %v1538_v3 = vadd.f32 %v2318_v1, %v2858_v9 }
 0x1ea   : > { %v1532_v4 = vpop.f32.mrf.mxu1 }
 0x1eb   : > { %1753 = vst.msk [vmem:[%s2865_s24 + $0x130] sm:$0xff] %vm345_vm0, %v1689_v2  ;;  %v1692_v6 = vmax.f32 %v1538_v3, 0.0  ;;  %v1533_v7 = vadd.f32 %v2858_v9, %v1532_v4 }
 0x1ec   : > { %v2321_v8 = vpop.f32.mrf.mxu1 }
 0x1ed   : > { %1756 = vst.msk [vmem:[%s2865_s24 + $0x148] sm:$0xff] %vm345_vm0, %v1692_v6  ;;  %v1691_v10 = vmax.f32 %v1533_v7, 0.0  ;;  %v1548_v5 = vadd.f32 %v2321_v8, %v2858_v9 }
 0x1ee   : > { %v1542_v11 = vpop.f32.mrf.mxu1 }
 0x1ef   : > { %1755 = vst.msk [vmem:[%s2865_s24 + $0x140] sm:$0xff] %vm345_vm0, %v1691_v10  ;;  %v1694_v12 = vmax.f32 %v1548_v5, 0.0  ;;  %v1543_v13 = vadd.f32 %v2858_v9, %v1542_v11 }
 0x1f0   : > { %v2324_v14 = vpop.f32.mrf.mxu1 }
 0x1f1   : > { %1758 = vst.msk [vmem:[%s2865_s24 + $0x158] sm:$0xff] %vm345_vm0, %v1694_v12  ;;  %v1693_v15 = vmax.f32 %v1543_v13, 0.0  ;;  %v1558_v16 = vadd.f32 %v2324_v14, %v2858_v9 }
 0x1f2   : > { %v1552_v17 = vpop.f32.mrf.mxu1 }
 0x1f3   : > { %1757 = vst.msk [vmem:[%s2865_s24 + $0x150] sm:$0xff] %vm345_vm0, %v1693_v15  ;;  %v1696_v18 = vmax.f32 %v1558_v16, 0.0  ;;  %v1553_v19 = vadd.f32 %v2858_v9, %v1552_v17 }
 0x1f4   : > { %v2327_v20 = vpop.f32.mrf.mxu1 }
 0x1f5   : > { %1760 = vst.msk [vmem:[%s2865_s24 + $0x168] sm:$0xff] %vm345_vm0, %v1696_v18  ;;  %v1695_v21 = vmax.f32 %v1553_v19, 0.0  ;;  %v1568_v22 = vadd.f32 %v2327_v20, %v2858_v9 }
 0x1f6   : > { %v1562_v23 = vpop.f32.mrf.mxu1 }
 0x1f7   : > { %1759 = vst.msk [vmem:[%s2865_s24 + $0x160] sm:$0xff] %vm345_vm0, %v1695_v21  ;;  %v1698_v24 = vmax.f32 %v1568_v22, 0.0  ;;  %v1563_v25 = vadd.f32 %v2858_v9, %v1562_v23 }
 0x1f8   : > { %v2330_v26 = vpop.f32.mrf.mxu1 }
 0x1f9   : > { %1762 = vst.msk [vmem:[%s2865_s24 + $0x178] sm:$0xff] %vm345_vm0, %v1698_v24  ;;  %v1697_v27 = vmax.f32 %v1563_v25, 0.0  ;;  %v1578_v28 = vadd.f32 %v2330_v26, %v2858_v9 }
 0x1fa   : > { %v1572_v29 = vpop.f32.mrf.mxu1 }
 0x1fb   : > { %1761 = vst.msk [vmem:[%s2865_s24 + $0x170] sm:$0xff] %vm345_vm0, %v1697_v27  ;;  %v1700_v30 = vmax.f32 %v1578_v28, 0.0  ;;  %v1573_v31 = vadd.f32 %v2858_v9, %v1572_v29 }
 0x1fc   : > { %v2333_v32 = vpop.f32.mrf.mxu1 }
 0x1fd   : > { %1764 = vst.msk [vmem:[%s2865_s24 + $0x188] sm:$0xff] %vm345_vm0, %v1700_v30  ;;  %v1699_v33 = vmax.f32 %v1573_v31, 0.0  ;;  %v1588_v34 = vadd.f32 %v2333_v32, %v2858_v9 }
 0x1fe   : > { %v1582_v35 = vpop.f32.mrf.mxu1 }
 0x1ff   : > { %1763 = vst.msk [vmem:[%s2865_s24 + $0x180] sm:$0xff] %vm345_vm0, %v1699_v33  ;;  %v1702_v36 = vmax.f32 %v1588_v34, 0.0  ;;  %v1583_v37 = vadd.f32 %v2858_v9, %v1582_v35 }
 0x200   : > { %v2336_v38 = vpop.f32.mrf.mxu1 }
 0x201   : > { %1766 = vst.msk [vmem:[%s2865_s24 + $0x198] sm:$0xff] %vm345_vm0, %v1702_v36  ;;  %v1701_v39 = vmax.f32 %v1583_v37, 0.0  ;;  %v1598_v40 = vadd.f32 %v2336_v38, %v2858_v9 }
 0x202   : > { %v1592_v41 = vpop.f32.mrf.mxu1 }
 0x203   : > { %1765 = vst.msk [vmem:[%s2865_s24 + $0x190] sm:$0xff] %vm345_vm0, %v1701_v39  ;;  %v1704_v42 = vmax.f32 %v1598_v40, 0.0  ;;  %v1593_v43 = vadd.f32 %v2858_v9, %v1592_v41 }
 0x204   : > { %v2339_v44 = vpop.f32.mrf.mxu1 }
 0x205   : > { %1768 = vst.msk [vmem:[%s2865_s24 + $0x1a8] sm:$0xff] %vm345_vm0, %v1704_v42  ;;  %v1703_v45 = vmax.f32 %v1593_v43, 0.0  ;;  %v1608_v46 = vadd.f32 %v2339_v44, %v2858_v9 }
 0x206   : > { %v1602_v47 = vpop.f32.mrf.mxu1 }
 0x207   : > { %1767 = vst.msk [vmem:[%s2865_s24 + $0x1a0] sm:$0xff] %vm345_vm0, %v1703_v45  ;;  %v1706_v48 = vmax.f32 %v1608_v46, 0.0  ;;  %v1603_v49 = vadd.f32 %v2858_v9, %v1602_v47 }
 0x208   : > { %v2342_v50 = vpop.f32.mrf.mxu1 }
 0x209   : > { %1770 = vst.msk [vmem:[%s2865_s24 + $0x1b8] sm:$0xff] %vm345_vm0, %v1706_v48  ;;  %v1705_v51 = vmax.f32 %v1603_v49, 0.0  ;;  %v1618_v52 = vadd.f32 %v2342_v50, %v2858_v9 }
 0x20a   : > { %v1612_v53 = vpop.f32.mrf.mxu1 }
 0x20b   : > { %1769 = vst.msk [vmem:[%s2865_s24 + $0x1b0] sm:$0xff] %vm345_vm0, %v1705_v51  ;;  %v1708_v54 = vmax.f32 %v1618_v52, 0.0  ;;  %v1613_v55 = vadd.f32 %v2858_v9, %v1612_v53 }
 0x20c   : > { %v2345_v56 = vpop.f32.mrf.mxu1 }
 0x20d   : > { %1772 = vst.msk [vmem:[%s2865_s24 + $0x1c8] sm:$0xff] %vm345_vm0, %v1708_v54  ;;  %v1707_v57 = vmax.f32 %v1613_v55, 0.0  ;;  %v1628_v58 = vadd.f32 %v2345_v56, %v2858_v9 }
 0x20e   : > { %v1622_v59 = vpop.f32.mrf.mxu1 }
 0x20f   : > { %1771 = vst.msk [vmem:[%s2865_s24 + $0x1c0] sm:$0xff] %vm345_vm0, %v1707_v57  ;;  %v1710_v60 = vmax.f32 %v1628_v58, 0.0  ;;  %v1623_v61 = vadd.f32 %v2858_v9, %v1622_v59 }
 0x210   : > { %v2348_v62 = vpop.f32.mrf.mxu1 }
 0x211   : > { %1774 = vst.msk [vmem:[%s2865_s24 + $0x1d8] sm:$0xff] %vm345_vm0, %v1710_v60  ;;  %v1709_v63 = vmax.f32 %v1623_v61, 0.0  ;;  %v1638_v0 = vadd.f32 %v2348_v62, %v2858_v9 }
 0x212   : > { %v1632_v1 = vpop.f32.mrf.mxu1 }
 0x213   : > { %1773 = vst.msk [vmem:[%s2865_s24 + $0x1d0] sm:$0xff] %vm345_vm0, %v1709_v63  ;;  %v1712_v2 = vmax.f32 %v1638_v0, 0.0  ;;  %v1633_v3 = vadd.f32 %v2858_v9, %v1632_v1 }
 0x214   : > { %v2351_v4 = vpop.f32.mrf.mxu1 }
 0x215   : > { %1776 = vst.msk [vmem:[%s2865_s24 + $0x1e8] sm:$0xff] %vm345_vm0, %v1712_v2  ;;  %v1711_v6 = vmax.f32 %v1633_v3, 0.0  ;;  %v1648_v7 = vadd.f32 %v2351_v4, %v2858_v9 }
 0x216   : > { %v1642_v8 = vpop.f32.mrf.mxu1 }
 0x217   : > { %1775 = vst.msk [vmem:[%s2865_s24 + $0x1e0] sm:$0xff] %vm345_vm0, %v1711_v6  ;;  %v1714_v10 = vmax.f32 %v1648_v7, 0.0  ;;  %v1643_v5 = vadd.f32 %v2858_v9, %v1642_v8 }
 0x219   : > { %1778 = vst.msk [vmem:[%s2865_s24 + $0x1f8] sm:$0xff] %vm345_vm0, %v1714_v10  ;;  %v1713_v11 = vmax.f32 %v1643_v5, 0.0 }
 0x21b   : > { %1777 = vst.msk [vmem:[%s2865_s24 + $0x1f0] sm:$0xff] %vm345_vm0, %v1713_v11 }
 0x21c PF: > { %s17_s21 = sadd.s32 1, %s2374_s21  }
 0x21d   : > { %p14_p4 = scmp.ge.s32.totalorder %s17_s21, 6  }
 0x21f   :  { %16 = sbr.rel (!%p14_p4) target bundleno = 1 (0x1), region = 82 }

</bundles_post_ra>
